<compile_context>
chip_gen: v6e
topology: v6e:2x2x1
jax: 0.10.0
libtpu: 0.0.40
codegen_flags: <defaults>
</compile_context>

<pallas_src>
import math

import jax
import jax.numpy as jnp
from jax import lax
from jax.experimental import pallas as pl
from jax.experimental.pallas import tpu as pltpu


def _sdpa_body(q, k, v, bias, out_ref, attn_ref, inv_temperature):
    # scores = (q @ k^T) * (1/temperature), accumulated in f32 on the MXU.
    # Operands are fed at their native dtype; the scale is applied on the f32
    # scores so low-precision inputs are not rounded an extra time.
    scores = lax.dot_general(q, k, (((1,), (1,)), ((), ())),
                             preferred_element_type=jnp.float32)      # [tq, Sk]
    scores = scores * inv_temperature
    if bias is not None:
        # Additive 0 / -1e9 bias: one VPU add instead of int compare + select.
        # (For fully-masked rows this yields a score-weighted near-uniform row
        # rather than the exactly-uniform row of masked_fill; identical to the
        # reference whenever a row has at least one unmasked key.)
        scores = scores + bias
    # Softmax over keys (single reduction pass: max, exp, sum).
    # TODO(synk): for Sk >> 512 chunk this reduction over lane blocks with a
    # lax.fori_loop (two-pass max then exp/sum) to bound vreg pressure/spills.
    m = jnp.max(scores, axis=-1, keepdims=True)
    e = jnp.exp(scores - m)
    s = jnp.sum(e, axis=-1, keepdims=True)
    attn = e * pl.reciprocal(s)          # per-row reciprocal; divides -> multiplies
    # TODO(synk): attn_dropout (p=0.1) is identity in eval mode; training-mode
    # dropout would use pltpu.prng_seed + pltpu.stateful_bernoulli.
    out = jnp.dot(attn.astype(v.dtype), v,
                  preferred_element_type=jnp.float32)                 # [tq, D]
    out_ref[0] = out.astype(out_ref.dtype)
    if attn_ref is not None:
        attn_ref[0] = attn.astype(attn_ref.dtype)


def _make_kernel(*, masked, bias_rank3, return_attn, inv_temperature):
    def kernel(*refs):
        if masked:
            q_ref, k_ref, v_ref, bias_ref = refs[:4]
            outs = refs[4:]
            bias = bias_ref[0] if bias_rank3 else bias_ref[...]
        else:
            q_ref, k_ref, v_ref = refs[:3]
            outs = refs[3:]
            bias = None
        out_ref = outs[0]
        attn_ref = outs[1] if return_attn else None
        _sdpa_body(q_ref[0], k_ref[0], v_ref[0], bias, out_ref, attn_ref,
                   inv_temperature)
    return kernel


def scaled_dot_product_attention(q, k, v, temperature, mask=None, *,
                                 tq=None, return_attn=True):
    """q, k, v: [B, H, S, D].

    Returns (output [B,H,Sq,D], attn [B,H,Sq,Sk]) when return_attn=True,
    else just output.
    """
    B, H, Sq, D = q.shape
    Sk = k.shape[2]
    BH = B * H

    # Query-row tile: 256 fills the 2x256^2 MXU on v6e/v7x; otherwise fall back
    # to the largest power-of-two divisor (128 matches v5e's 4x128^2 MXU).
    if tq is None:
        tq = next((c for c in (256, 128, 64, 32, 16, 8) if Sq % c == 0), Sq)
    tq = min(tq, Sq)
    assert Sq % tq == 0, "query length must be divisible by the query row tile"

    q3 = q.reshape(BH, Sq, D)
    k3 = k.reshape(BH, Sk, D)
    v3 = v.reshape(BH, Sk, D)

    q_spec = pl.BlockSpec((1, tq, D), lambda b, i: (b, i, 0))
    # K/V are resident across the inner (query-tile) grid axis; the default
    # double-buffering still reserves 2x their block. TODO(synk): on v7x
    # (64 MiB VMEM) shrink this with pipeline_mode=pl.Buffered or a per-head
    # VMEM staging scratch for very long Sk.
    kv_spec = pl.BlockSpec((1, Sk, D), lambda b, i: (b, 0, 0))
    out_spec = pl.BlockSpec((1, tq, D), lambda b, i: (b, i, 0))
    # TODO(synk): D=64 leaves the output store lane-masked (<128 lanes); for
    # peak store bandwidth fold two heads per grid step so the lane dim is 128.

    in_specs = [q_spec, kv_spec, kv_spec]
    args = [q3, k3, v3]

    itemsize = q.dtype.itemsize
    bytes_accessed = (q3.size + k3.size + v3.size + BH * Sq * D) * itemsize

    bias_rank3 = False
    if mask is not None:
        mask = jnp.asarray(mask)
        while mask.ndim < 4:
            mask = mask[None]
        # Precompute an additive f32 bias at its *natural* shape: when the mask
        # is shared across batch & heads it stays [Sq, Sk] and the index_map
        # simply ignores the batch grid axis — no [BH, Sq, Sk] int32 array in HBM.
        bias = jnp.where(mask == 0, jnp.float32(-1e9), jnp.float32(0.0))
        if mask.shape[0] == 1 and mask.shape[1] == 1:
            bias = jnp.broadcast_to(bias[0, 0], (Sq, Sk))
            bias_spec = pl.BlockSpec((tq, Sk), lambda b, i: (i, 0))
        else:
            bias_rank3 = True
            bias = jnp.broadcast_to(bias, (B, H, Sq, Sk)).reshape(BH, Sq, Sk)
            bias_spec = pl.BlockSpec((1, tq, Sk), lambda b, i: (b, i, 0))
        in_specs.append(bias_spec)
        args.append(bias)
        bytes_accessed += bias.size * 4

    out_shapes = [jax.ShapeDtypeStruct((BH, Sq, D), q.dtype)]
    out_specs = [out_spec]
    if return_attn:
        out_shapes.append(jax.ShapeDtypeStruct((BH, Sq, Sk), q.dtype))
        out_specs.append(pl.BlockSpec((1, tq, Sk), lambda b, i: (b, i, 0)))
        bytes_accessed += BH * Sq * Sk * itemsize

    flops = 4 * BH * Sq * Sk * D                      # two matmuls
    transcendentals = BH * Sq * Sk                    # exp in softmax

    # Rough VMEM budget (double-buffered blocks + live f32 score intermediates);
    # raise the scoped limit only when the 32 MiB default would not fit.
    # TODO(synk): if this exceeds ~64 MiB (v7x physical VMEM), tile the key axis
    # (online softmax over Sk chunks) instead of growing the limit further.
    vmem_needed = 2 * ((tq * D + 2 * Sk * D + tq * D) * itemsize)
    if mask is not None:
        vmem_needed += 2 * tq * Sk * 4
    if return_attn:
        vmem_needed += 2 * tq * Sk * itemsize
    vmem_needed += 3 * tq * Sk * 4 + (1 << 20)
    cp_kwargs = dict(dimension_semantics=("parallel", "parallel"))
    if vmem_needed > (32 << 20):
        cp_kwargs["vmem_limit_bytes"] = int(min(vmem_needed, 64 << 20))

    kernel = _make_kernel(masked=(mask is not None), bias_rank3=bias_rank3,
                          return_attn=return_attn,
                          inv_temperature=float(1.0 / temperature))

    outs = pl.pallas_call(
        kernel,
        out_shape=tuple(out_shapes),
        grid_spec=pltpu.PrefetchScalarGridSpec(
            num_scalar_prefetch=0,
            grid=(BH, Sq // tq),
            in_specs=in_specs,
            out_specs=out_specs,
        ),
        compiler_params=pltpu.CompilerParams(**cp_kwargs),
        cost_estimate=pl.CostEstimate(
            flops=int(flops),
            transcendentals=int(transcendentals),
            bytes_accessed=int(bytes_accessed)),
    )(*args)

    if return_attn:
        out3, attn3 = outs
        return out3.reshape(B, H, Sq, D), attn3.reshape(B, H, Sq, Sk)
    out3, = outs
    return out3.reshape(B, H, Sq, D)


def reference(q, k, v, temperature, mask=None):
    """Pure-JAX reference matching the PyTorch module (eval mode)."""
    attn = jnp.einsum('bhqd,bhkd->bhqk', q / temperature, k)
    if mask is not None:
        attn = jnp.where(mask == 0, -1e9, attn)
    attn = jax.nn.softmax(attn, axis=-1)
    out = jnp.einsum('bhqk,bhkd->bhqd', attn, v)
    return out, attn


if __name__ == "__main__":
    B, H, S, D = 2, 4, 128, 64       # small but lane-dense (Sk=128, MXU-filling tq=128)
    temperature = math.sqrt(D)

    key = jax.random.PRNGKey(0)
    kq, kk, kv = jax.random.split(key, 3)
    q = jax.random.normal(kq, (B, H, S, D), jnp.float32)
    k = jax.random.normal(kk, (B, H, S, D), jnp.float32)
    v = jax.random.normal(kv, (B, H, S, D), jnp.float32)

    # --- no mask ---
    out, attn = scaled_dot_product_attention(q, k, v, temperature)
    out, attn = jax.block_until_ready((out, attn))
    ref_out, ref_attn = reference(q, k, v, temperature)
    assert out.shape == (B, H, S, D) and attn.shape == (B, H, S, S)
    assert jnp.allclose(out, ref_out, atol=1e-4, rtol=1e-4), "output mismatch (no mask)"
    assert jnp.allclose(attn, ref_attn, atol=1e-4, rtol=1e-4), "attn mismatch (no mask)"

    # --- causal mask (broadcast over batch & heads, as in the PyTorch usage) ---
    causal = jnp.tril(jnp.ones((S, S), jnp.int32)).reshape(1, 1, S, S)
    out_m, attn_m = scaled_dot_product_attention(q, k, v, temperature, mask=causal)
    out_m, attn_m = jax.block_until_ready((out_m, attn_m))
    ref_out_m, ref_attn_m = reference(q, k, v, temperature, mask=causal)
    assert jnp.allclose(out_m, ref_out_m, atol=1e-4, rtol=1e-4), "output mismatch (masked)"
    assert jnp.allclose(attn_m, ref_attn_m, atol=1e-4, rtol=1e-4), "attn mismatch (masked)"

    # --- output-only path (skips the attn HBM writeback entirely) ---
    out_only = scaled_dot_product_attention(q, k, v, temperature, mask=causal,
                                            return_attn=False)
    out_only = jax.block_until_ready(out_only)
    assert jnp.allclose(out_only, ref_out_m, atol=1e-4, rtol=1e-4), \
        "output mismatch (return_attn=False)"

    # --- bf16 inputs feed the MXU natively (no f32 upcast of q/k/v) ---
    qb, kb, vb = q.astype(jnp.bfloat16), k.astype(jnp.bfloat16), v.astype(jnp.bfloat16)
    out_b, attn_b = scaled_dot_product_attention(qb, kb, vb, temperature)
    out_b, attn_b = jax.block_until_ready((out_b, attn_b))
    ref_out_b, ref_attn_b = reference(qb.astype(jnp.float32), kb.astype(jnp.float32),
                                      vb.astype(jnp.float32), temperature)
    assert jnp.allclose(out_b.astype(jnp.float32), ref_out_b, atol=5e-2, rtol=5e-2), \
        "output mismatch (bf16)"
    assert jnp.allclose(attn_b.astype(jnp.float32), ref_attn_b, atol=5e-2, rtol=5e-2), \
        "attn mismatch (bf16)"

    print("KERNEL_OK")
</pallas_src>

<mosaic_0001>
module attributes {stable_mosaic.version = 11 : i64} {
  func.func @kernel(%arg0: i32, %arg1: i32, %arg2: memref<1x128x64xf32, #tpu.memory_space<vmem>>, %arg3: memref<1x128x64xf32, #tpu.memory_space<vmem>>, %arg4: memref<1x128x64xf32, #tpu.memory_space<vmem>>, %arg5: memref<1x128x64xf32, #tpu.memory_space<vmem>>, %arg6: memref<1x128x128xf32, #tpu.memory_space<vmem>>) attributes {dimension_semantics = [#tpu.dimension_semantics<parallel>, #tpu.dimension_semantics<parallel>], iteration_bounds = array<i64: 8, 1>, scalar_prefetch = 0 : i64, scratch_operands = 0 : i64, tpu.core_type = #tpu.core_type<tc>, window_params = [{transform_indices = @transform_0, window_bounds = array<i64: 1, 128, 64>}, {transform_indices = @transform_1, window_bounds = array<i64: 1, 128, 64>}, {transform_indices = @transform_2, window_bounds = array<i64: 1, 128, 64>}, {transform_indices = @transform_3, window_bounds = array<i64: 1, 128, 64>}, {transform_indices = @transform_4, window_bounds = array<i64: 1, 128, 128>}]} {
    %c0 = arith.constant 0 : index
    %c0_0 = arith.constant 0 : index
    %c0_1 = arith.constant 0 : index
    %0 = vector.load %arg2[%c0, %c0_0, %c0_1] : memref<1x128x64xf32, #tpu.memory_space<vmem>>, vector<1x128x64xf32>
    %1 = vector.shape_cast %0 : vector<1x128x64xf32> to vector<128x64xf32>
    %c0_2 = arith.constant 0 : index
    %c0_3 = arith.constant 0 : index
    %c0_4 = arith.constant 0 : index
    %2 = vector.load %arg3[%c0_2, %c0_3, %c0_4] : memref<1x128x64xf32, #tpu.memory_space<vmem>>, vector<1x128x64xf32>
    %3 = vector.shape_cast %2 : vector<1x128x64xf32> to vector<128x64xf32>
    %c0_5 = arith.constant 0 : index
    %c0_6 = arith.constant 0 : index
    %c0_7 = arith.constant 0 : index
    %4 = vector.load %arg4[%c0_5, %c0_6, %c0_7] : memref<1x128x64xf32, #tpu.memory_space<vmem>>, vector<1x128x64xf32>
    %5 = vector.shape_cast %4 : vector<1x128x64xf32> to vector<128x64xf32>
    %cst = arith.constant dense<0.000000e+00> : vector<128x128xf32>
    %6 = tpu.matmul %1, %3, %cst {dimension_numbers = #tpu.dot_dimension_numbers<[1], [1], [0], [0], [0, 0, 1, 0], [], []>} : vector<128x64xf32>, vector<128x64xf32>, vector<128x128xf32> -> vector<128x128xf32>
    %cst_8 = arith.constant 1.250000e-01 : f32
    %7 = vector.broadcast %cst_8 : f32 to vector<128x128xf32>
    %8 = arith.mulf %6, %7 : vector<128x128xf32>
    %cst_9 = arith.constant dense<0xFF800000> : vector<128xf32>
    %9 = vector.multi_reduction <maximumf>, %8, %cst_9 [1] : vector<128x128xf32> to vector<128xf32>
    %10 = vector.shape_cast %9 : vector<128xf32> to vector<128x1xf32>
    %11 = vector.broadcast %10 : vector<128x1xf32> to vector<128x128xf32>
    %12 = arith.subf %8, %11 : vector<128x128xf32>
    %13 = math.exp %12 : vector<128x128xf32>
    %cst_10 = arith.constant dense<0.000000e+00> : vector<128xf32>
    %14 = vector.multi_reduction <add>, %13, %cst_10 [1] : vector<128x128xf32> to vector<128xf32>
    %15 = vector.shape_cast %14 : vector<128xf32> to vector<128x1xf32>
    %16 = tpu.reciprocal %15 : vector<128x1xf32> -> vector<128x1xf32>
    %17 = vector.broadcast %16 : vector<128x1xf32> to vector<128x128xf32>
    %18 = arith.mulf %13, %17 : vector<128x128xf32>
    %cst_11 = arith.constant dense<0.000000e+00> : vector<128x64xf32>
    %19 = tpu.matmul %18, %5, %cst_11 {dimension_numbers = #tpu.dot_dimension_numbers<[1], [0], [0], [1], [0, 0, 1, 1], [], []>} : vector<128x128xf32>, vector<128x64xf32>, vector<128x64xf32> -> vector<128x64xf32>
    %c0_12 = arith.constant 0 : index
    %c0_13 = arith.constant 0 : index
    %c0_14 = arith.constant 0 : index
    %20 = vector.load %arg5[%c0_12, %c0_13, %c0_14] : memref<1x128x64xf32, #tpu.memory_space<vmem>>, vector<1x128x64xf32>
    %21 = vector.shape_cast %20 : vector<1x128x64xf32> to vector<128x64xf32>
    %22 = vector.shape_cast %19 : vector<128x64xf32> to vector<1x128x64xf32>
    tpu.vector_store %arg5[%c0_12, %c0_13, %c0_14], %22 {strides = array<i32>} : memref<1x128x64xf32, #tpu.memory_space<vmem>>, vector<1x128x64xf32>,
    %c0_15 = arith.constant 0 : index
    %c0_16 = arith.constant 0 : index
    %c0_17 = arith.constant 0 : index
    %23 = vector.load %arg6[%c0_15, %c0_16, %c0_17] : memref<1x128x128xf32, #tpu.memory_space<vmem>>, vector<1x128x128xf32>
    %24 = vector.shape_cast %23 : vector<1x128x128xf32> to vector<128x128xf32>
    %25 = vector.shape_cast %18 : vector<128x128xf32> to vector<1x128x128xf32>
    tpu.vector_store %arg6[%c0_15, %c0_16, %c0_17], %25 {strides = array<i32>} : memref<1x128x128xf32, #tpu.memory_space<vmem>>, vector<1x128x128xf32>,
    return
  }
  func.func @transform_0(%arg0: i32, %arg1: i32) -> (i32, i32, i32) {
    %c0_i32 = arith.constant 0 : i32
    %c0_i32_0 = arith.constant 0 : i32
    return %arg0, %arg1, %c0_i32 : i32, i32, i32
  }
  func.func @transform_1(%arg0: i32, %arg1: i32) -> (i32, i32, i32) {
    %c0_i32 = arith.constant 0 : i32
    %c0_i32_0 = arith.constant 0 : i32
    %c0_i32_1 = arith.constant 0 : i32
    return %arg0, %c0_i32, %c0_i32_0 : i32, i32, i32
  }
  func.func @transform_2(%arg0: i32, %arg1: i32) -> (i32, i32, i32) {
    %c0_i32 = arith.constant 0 : i32
    %c0_i32_0 = arith.constant 0 : i32
    %c0_i32_1 = arith.constant 0 : i32
    return %arg0, %c0_i32, %c0_i32_0 : i32, i32, i32
  }
  func.func @transform_3(%arg0: i32, %arg1: i32) -> (i32, i32, i32) {
    %c0_i32 = arith.constant 0 : i32
    %c0_i32_0 = arith.constant 0 : i32
    return %arg0, %arg1, %c0_i32 : i32, i32, i32
  }
  func.func @transform_4(%arg0: i32, %arg1: i32) -> (i32, i32, i32) {
    %c0_i32 = arith.constant 0 : i32
    %c0_i32_0 = arith.constant 0 : i32
    return %arg0, %arg1, %c0_i32 : i32, i32, i32
  }
}

</mosaic_0001>

<bundles_post_ra>
// kernel: tpu_custom_call.1
= control target key start
LH: loop header
LB: loop body
LE: loop exit
PB: predicated region body
PF: predicated region fallthrough
CT: control target
= control target key end

     0   :  { %10 = vsyncpa [#allocation3], 0  ;;  %s1962_s0 = inlined_call_operand.vmem [shape: f32[8,128,64], index: 0, kind: input, shape index: {}]   ;;  %s1963_s1 = inlined_call_operand.vmem [shape: f32[8,128,64], index: 1, kind: input, shape index: {}]   ;;  %s1964_s2 = inlined_call_operand.vmem [shape: f32[8,128,64], index: 2, kind: input, shape index: {}]   ;;  %s1965_s3 = inlined_call_operand.vmem [shape: f32[8,128,64], index: 3, kind: output, shape index: {0}]   ;;  %s1966_s4 = inlined_call_operand.hbm [shape: f32[8,128,128], index: 4, kind: output, shape index: {1}]  }
   0x1   :  { %12 = vsyncpa [#allocation3 + $0x1], 0  ;;  %s1546_s15 = smov 0   ;;  %s1548_s16 = smov 0  }
   0x2   :  { %s1550_s17 = smov 0   ;;  %s1552_s18 = smov 0  }
   0x3   :  { %s1554_s19 = smov 0   ;;  %s1556_s20 = smov 0  }
   0x4 LB: > { %s1087_s21 = sadd.s32 4294967295, %s1516_s20   ;;  %s1088_s22 = sadd.s32 4294967294, %s1516_s20   ;;  %s1516_s20 = sphi %s1556_s20, %s18_s20   ;;  %s1512_s19 = sphi %s1554_s19, %s1973_s19   ;;  %s1508_s18 = sphi %s1552_s18, %s1972_s18   ;;  %s1504_s17 = sphi %s1550_s17, %s1971_s17   ;;  %s1500_s16 = sphi %s1548_s16, %s1970_s16   ;;  %s1496_s15 = sphi %s1546_s15, %s1969_s15  }
   0x5   : > { %s30_s23 = sadd.s32 1, %s1512_s19  ;;  %s147_s24 = sadd.s32 1, %s1504_s17 }
   0x6   : > { %p32_p0 = scmp.ge.s32.totalorder %s30_s23, 8  ;;  %p157_p1 = scmp.ne.s32.totalorder %s1504_s17, %s1500_s16 }
   0x7   : > { %p158_p2 = scmp.eq.s32.totalorder %s1087_s21, 7  ;;  %p163_p3 = scmp.ne.s32.totalorder %s1500_s16, %s1496_s15 }
   0x8   : > { %s1975_s23 = smov (%p32_p0, %s30_s23), 0  ;;  %p164_p5 = scmp.eq.s32.totalorder %s1088_s22, 7 }
   0x9   : > { %p1586_p4 = por %p158_p2, %p157_p1  ;;  %s142_s26 = ssub.s32 %s1512_s19, %s1975_s23 }
   0xa   : > { %p1091_p6 = scmp.ge.s32.totalorder %s1516_s20, 1  ;;  %p145_p7 = scmp.eq.s32.totalorder %s142_s26, 0 }
   0xb   : > { %p1593_p8 = por %p164_p5, %p163_p3  ;;  %p211_p9 = scmp.lt.s32.totalorder %s1516_s20, 9 }
   0xc   : > { %s1599_s28 = scalar_select %p145_p7, %s1504_s17, %s147_s24  }
   0xd   : > { %p212_p10 = pnand %p1091_p6, %p211_p9 }
   0xe   : > { %p261_p11 = scmp.lt.s32.totalorder (!%p212_p10), %s1508_s18, 7  ;;  %s257_s14 = sand.u32 (!%p212_p10), 1, %s1500_s16  }
   0xf   : > { %215 = sbr.rel (%p212_p10) target bundleno = 824 (0x338), region = 32  ;;  %s1092_s21 = sshll.u32 (!%p212_p10), %s257_s14, 7 }
  0x10   : > { %s1835_s22 = scalar_lea.vmem (!%p212_p10), [#allocation2], %s1092_s21  ;;  %s1142_s24 = sshll.u32 (!%p212_p10), %s1508_s18, 11 }
  0x11   : > { %s947_s26 = sshll.u32 (!%p212_p10), %s1835_s22, 4  ;;  %s1873_s6 = scalar_lea.hbm (!%p212_p10), %s1966_s4, %s1142_s24  ;;  %s1875_s26 = int_to_ptr.vmem [resolvable:$true] %s947_s26 }
  0x12   : > { %s1440_s8 = scalar_lea.vmem (!%p212_p10), %s1875_s26, 2048 }
  0x13   : > { %p1441_p12 = scmp.ne.s32.totalorder (!%p212_p10), %s1875_s26, %s1440_s8 }
  0x14   : > { %s262_s29 = scalar_select %p261_p11, %s1508_s18, 7  ;;  %vm339_vm0 = vcmask 523264  }
  0x15   : > { %p1442_p13 = pnand %p1441_p12, %p1586_p4  ;;  %s1518_s18 = smov [#allocation2]  }
  0x16   : > { %s1603_s30 = sshll.u32 %s262_s29, 7  ;;  %s1444_s9 = sshll.u32 %s1518_s18, 4  ;;  %s1445_s9 = int_to_ptr.vmem [resolvable:$false] %s1444_s9 }
  0x17   : > { %s1609_s7 = scalar_lea.vmem %s1963_s1, %s1603_s30  ;;  %s1619_s10 = scalar_lea.vmem %s1962_s0, %s1603_s30 }
  0x18   : > { %v322_v0 = vld [vmem:[%s1609_s7 + $0x78] sm:$0xff]  ;;  %v321_v1 = vld [vmem:[%s1609_s7 + $0x70] sm:$0xff]  ;;  %v320_v2 = vld [vmem:[%s1609_s7 + $0x68] sm:$0xff]  ;;  %s1749_s13 = scalar_lea.vmem %s1964_s2, %s1603_s30  ;;  %p1443_p0 = pneg %p1442_p13 }
  0x19   : > { %1207 = vmatprep.subr.msk.mxu0 %vm339_vm0, %v322_v0  ;;  %v291_v3 = vld [vmem:[%s1619_s10] sm:$0xff]  ;;  %v318_v5 = vld [vmem:[%s1609_s7 + $0x58] sm:$0xff]  ;;  %v317_v6 = vld [vmem:[%s1609_s7 + $0x50] sm:$0xff]  ;;  %p1447_p1 = scmp.lt.s32.totalorder %s1875_s26, %s1445_s9 }
  0x1a   : > { %1208 = vmatpush3.xpose.msk.msra.mxu0 %vm339_vm0, %v322_v0  ;;  %1239 = vmatprep.mubr.msk.f32.mxu0 %vm339_vm0, %v291_v3  ;;  %v319_v4 = vld [vmem:[%s1609_s7 + $0x60] sm:$0xff]  ;;  %v316_v7 = vld [vmem:[%s1609_s7 + $0x48] sm:$0xff]  ;;  %v314_v9 = vld [vmem:[%s1609_s7 + $0x38] sm:$0xff] }
  0x1b   : > { %1209 = vmatprep.subr.msk.mxu0 %vm339_vm0, %v321_v1  ;;  %v315_v8 = vld [vmem:[%s1609_s7 + $0x40] sm:$0xff]  ;;  %v313_v10 = vld [vmem:[%s1609_s7 + $0x30] sm:$0xff]  ;;  %v312_v11 = vld [vmem:[%s1609_s7 + $0x28] sm:$0xff] }
  0x1c   : > { %v311_v12 = vld [vmem:[%s1609_s7 + $0x20] sm:$0xff]  ;;  %v310_v13 = vld [vmem:[%s1609_s7 + $0x18] sm:$0xff]  ;;  %v309_v14 = vld [vmem:[%s1609_s7 + $0x10] sm:$0xff] }
  0x1d   : > { %v308_v15 = vld [vmem:[%s1609_s7 + $0x8] sm:$0xff]  ;;  %v307_v16 = vld [vmem:[%s1609_s7] sm:$0xff]  ;;  %v293_v18 = vld [vmem:[%s1619_s10 + $0x10] sm:$0xff]  ;;  %s1879_s7 = scalar_lea.sflag [#allocation3], %s257_s14 }
  0x1e   : > { %1210 = vmatpush3.xpose.msk.msra.mxu0 %vm339_vm0, %v321_v1  ;;  %v292_v17 = vld [vmem:[%s1619_s10 + $0x8] sm:$0xff]  ;;  %v294_v19 = vld [vmem:[%s1619_s10 + $0x18] sm:$0xff]  ;;  %v295_v20 = vld [vmem:[%s1619_s10 + $0x20] sm:$0xff] }
  0x1f   : > { %1211 = vmatprep.subr.msk.mxu0 %vm339_vm0, %v320_v2  ;;  %v296_v21 = vld [vmem:[%s1619_s10 + $0x28] sm:$0xff]  ;;  %v297_v22 = vld [vmem:[%s1619_s10 + $0x30] sm:$0xff]  ;;  %v298_v23 = vld [vmem:[%s1619_s10 + $0x38] sm:$0xff] }
  0x20   : > { %v299_v24 = vld [vmem:[%s1619_s10 + $0x40] sm:$0xff]  ;;  %v300_v25 = vld [vmem:[%s1619_s10 + $0x48] sm:$0xff]  ;;  %v301_v26 = vld [vmem:[%s1619_s10 + $0x50] sm:$0xff] }
  0x21   : > { %v302_v27 = vld [vmem:[%s1619_s10 + $0x58] sm:$0xff]  ;;  %v303_v28 = vld [vmem:[%s1619_s10 + $0x60] sm:$0xff]  ;;  %v304_v29 = vld [vmem:[%s1619_s10 + $0x68] sm:$0xff] }
  0x22   : > { %1212 = vmatpush3.xpose.msk.msra.mxu0 %vm339_vm0, %v320_v2  ;;  %v305_v30 = vld [vmem:[%s1619_s10 + $0x70] sm:$0xff]  ;;  %v306_v31 = vld [vmem:[%s1619_s10 + $0x78] sm:$0xff]  ;;  %v336_v2 = vld [vmem:[%s1749_s13 + $0x68] sm:$0xff]  ;;  %s1446_s10 = scalar_lea.vmem %s1445_s9, 4096 }
  0x23   : > { %1213 = vmatprep.subr.msk.mxu0 %vm339_vm0, %v319_v4  ;;  %v338_v0 = vld [vmem:[%s1749_s13 + $0x78] sm:$0xff]  ;;  %v337_v1 = vld [vmem:[%s1749_s13 + $0x70] sm:$0xff]  ;;  %v335_v3 = vld [vmem:[%s1749_s13 + $0x60] sm:$0xff]  ;;  %p1448_p2 = scmp.lt.s32.totalorder %s1446_s10, %s1440_s8 }
  0x24   : > { %1263 = vmatprep.subr.mxu1 %v338_v0 }
  0x25   : > { %1264 = vmatpush3.msra.mxu1 %v338_v0  ;;  %p1449_p3 = por %p1448_p2, %p1447_p1 }
  0x26   : > { %1214 = vmatpush3.xpose.msk.msra.mxu0 %vm339_vm0, %v319_v4  ;;  %1265 = vmatprep.subr.mxu1 %v337_v1  ;;  %v334_v4 = vld [vmem:[%s1749_s13 + $0x58] sm:$0xff] }
  0x27   : > { %1215 = vmatprep.subr.msk.mxu0 %vm339_vm0, %v318_v5  ;;  %1266 = vmatpush3.msra.mxu1 %v337_v1  ;;  %v329_v1 = vld [vmem:[%s1749_s13 + $0x30] sm:$0xff]  ;;  %p1450_p5 = pnand %p1449_p3, %p1443_p0 }
  0x28   : > { %1267 = vmatprep.subr.mxu1 %v336_v2 }
  0x29   : > { %1268 = vmatpush3.msra.mxu1 %v336_v2 }
  0x2a   : > { %1216 = vmatpush3.xpose.msk.msra.mxu0 %vm339_vm0, %v318_v5  ;;  %1269 = vmatprep.subr.mxu1 %v335_v3  ;;  %v333_v5 = vld [vmem:[%s1749_s13 + $0x50] sm:$0xff] }
  0x2b   : > { %1217 = vmatprep.subr.msk.mxu0 %vm339_vm0, %v317_v6  ;;  %1270 = vmatpush3.msra.mxu1 %v335_v3 }
  0x2c   : > { %1271 = vmatprep.subr.mxu1 %v334_v4 }
  0x2d   : > { %1272 = vmatpush3.msra.mxu1 %v334_v4 }
  0x2e   : > { %1218 = vmatpush3.xpose.msk.msra.mxu0 %vm339_vm0, %v317_v6  ;;  %1273 = vmatprep.subr.mxu1 %v333_v5 }
  0x2f   : > { %1219 = vmatprep.subr.msk.mxu0 %vm339_vm0, %v316_v7  ;;  %1274 = vmatpush3.msra.mxu1 %v333_v5  ;;  %v327_v5 = vld [vmem:[%s1749_s13 + $0x20] sm:$0xff] }
  0x32   : > { %1220 = vmatpush3.xpose.msk.msra.mxu0 %vm339_vm0, %v316_v7 }
  0x33   : > { %1221 = vmatprep.subr.msk.mxu0 %vm339_vm0, %v315_v8 }
  0x36   : > { %1222 = vmatpush3.xpose.msk.msra.mxu0 %vm339_vm0, %v315_v8 }
  0x37   : > { %1223 = vmatprep.subr.msk.mxu0 %vm339_vm0, %v314_v9 }
  0x3a   : > { %1224 = vmatpush3.xpose.msk.msra.mxu0 %vm339_vm0, %v314_v9 }
  0x3b   : > { %1225 = vmatprep.subr.msk.mxu0 %vm339_vm0, %v313_v10 }
  0x3e   : > { %1226 = vmatpush3.xpose.msk.msra.mxu0 %vm339_vm0, %v313_v10 }
  0x3f   : > { %1227 = vmatprep.subr.msk.mxu0 %vm339_vm0, %v312_v11 }
  0x42   : > { %1228 = vmatpush3.xpose.msk.msra.mxu0 %vm339_vm0, %v312_v11 }
  0x43   : > { %1229 = vmatprep.subr.msk.mxu0 %vm339_vm0, %v311_v12 }
  0x46   : > { %1230 = vmatpush3.xpose.msk.msra.mxu0 %vm339_vm0, %v311_v12 }
  0x47   : > { %1231 = vmatprep.subr.msk.mxu0 %vm339_vm0, %v310_v13 }
  0x4a   : > { %1232 = vmatpush3.xpose.msk.msra.mxu0 %vm339_vm0, %v310_v13 }
  0x4b   : > { %1233 = vmatprep.subr.msk.mxu0 %vm339_vm0, %v309_v14 }
  0x4e   : > { %1234 = vmatpush3.xpose.msk.msra.mxu0 %vm339_vm0, %v309_v14 }
  0x4f   : > { %1235 = vmatprep.subr.msk.mxu0 %vm339_vm0, %v308_v15 }
  0x52   : > { %1236 = vmatpush3.xpose.msk.msra.mxu0 %vm339_vm0, %v308_v15 }
  0x53   : > { %1237 = vmatprep.subr.msk.mxu0 %vm339_vm0, %v307_v16 }
  0x56   : > { %1238 = vmatpush3.xpose.msk.msra.mxu0 %vm339_vm0, %v307_v16 }
  0x59   : > { %1240 = vmatmul.mubr.msk.f32.vlgmr.msra.gmra.mxu0 %vm339_vm0, %v292_v17 }
  0x5a   : > { %1242 = vmatprep.mubr.msk.f32.mxu0 %vm339_vm0, %v293_v18 }
  0x5d   : > { %1243 = vmatmul.mubr.msk.f32.gmra.mxu0 %vm339_vm0, %v294_v19 }
  0x5e   : > { %1245 = vmatprep.mubr.msk.f32.mxu0 %vm339_vm0, %v295_v20 }
  0x61   : > { %1246 = vmatmul.mubr.msk.f32.gmra.mxu0 %vm339_vm0, %v296_v21 }
  0x62   : > { %1248 = vmatprep.mubr.msk.f32.mxu0 %vm339_vm0, %v297_v22 }
  0x65   : > { %1249 = vmatmul.mubr.msk.f32.gmra.mxu0 %vm339_vm0, %v298_v23 }
  0x66   : > { %1251 = vmatprep.mubr.msk.f32.mxu0 %vm339_vm0, %v299_v24 }
  0x69   : > { %1252 = vmatmul.mubr.msk.f32.gmra.mxu0 %vm339_vm0, %v300_v25 }
  0x6a   : > { %1254 = vmatprep.mubr.msk.f32.mxu0 %vm339_vm0, %v301_v26 }
  0x6d   : > { %1255 = vmatmul.mubr.msk.f32.gmra.mxu0 %vm339_vm0, %v302_v27 }
  0x6e   : > { %1257 = vmatprep.mubr.msk.f32.mxu0 %vm339_vm0, %v303_v28 }
  0x71   : > { %1258 = vmatmul.mubr.msk.f32.gmra.mxu0 %vm339_vm0, %v304_v29 }
  0x72   : > { %1260 = vmatprep.mubr.msk.f32.mxu0 %vm339_vm0, %v305_v30 }
  0x75   : > { %1261 = vmatmul.mubr.msk.f32.gmra.mxu0 %vm339_vm0, %v306_v31 }
 0x119   : > { %v1241_v32 = vpop.f32.mrf.mxu0 }
 0x11a   : > { %v1700_v37 = vmul.f32 0.125, %v1241_v32 }
 0x11b   : > { %v502_v33 = vpop.f32.mrf.mxu0 }
 0x11c   : > { %v1697_v34 = vmul.f32 0.125, %v502_v33 }
 0x11d   : > { %v1244_v35 = vpop.f32.mrf.mxu0 }
 0x11e   : > { %597 = vmax.xlane.f32.xlu0 %v1697_v34  ;;  %v1706_v41 = vmul.f32 0.125, %v1244_v35 }
 0x11f   : > { %v512_v36 = vpop.f32.mrf.mxu0 }
 0x120   : > { %v1702_v38 = vmul.f32 0.125, %v512_v36 }
 0x121   : > { %v1247_v39 = vpop.f32.mrf.mxu0 }
 0x122   : > { %599 = vmax.xlane.f32.xlu0 %v1700_v37  ;;  %601 = vmax.xlane.f32.xlu1 %v1702_v38  ;;  %v1712_v45 = vmul.f32 0.125, %v1247_v39 }
 0x123   : > { %v522_v40 = vpop.f32.mrf.mxu0 }
 0x124   : > { %v1708_v42 = vmul.f32 0.125, %v522_v40 }
 0x125   : > { %v1250_v43 = vpop.f32.mrf.mxu0 }
 0x126   : > { %603 = vmax.xlane.f32.xlu1 %v1706_v41  ;;  %605 = vmax.xlane.f32.xlu0 %v1708_v42  ;;  %v1718_v49 = vmul.f32 0.125, %v1250_v43 }
 0x127   : > { %v532_v44 = vpop.f32.mrf.mxu0 }
 0x128   : > { %v1714_v46 = vmul.f32 0.125, %v532_v44 }
 0x129   : > { %v1253_v47 = vpop.f32.mrf.mxu0 }
 0x12a   : > { %607 = vmax.xlane.f32.xlu1 %v1712_v45  ;;  %609 = vmax.xlane.f32.xlu0 %v1714_v46  ;;  %v1724_v53 = vmul.f32 0.125, %v1253_v47 }
 0x12b   : > { %v542_v48 = vpop.f32.mrf.mxu0 }
 0x12c   : > { %v1720_v50 = vmul.f32 0.125, %v542_v48 }
 0x12d   : > { %v1256_v51 = vpop.f32.mrf.mxu0 }
 0x12e   : > { %611 = vmax.xlane.f32.xlu1 %v1718_v49  ;;  %613 = vmax.xlane.f32.xlu0 %v1720_v50  ;;  %v1730_v57 = vmul.f32 0.125, %v1256_v51 }
 0x12f   : > { %v552_v52 = vpop.f32.mrf.mxu0 }
 0x130   : > { %v1726_v54 = vmul.f32 0.125, %v552_v52 }
 0x131   : > { %v1259_v55 = vpop.f32.mrf.mxu0 }
 0x132   : > { %615 = vmax.xlane.f32.xlu1 %v1724_v53  ;;  %617 = vmax.xlane.f32.xlu0 %v1726_v54  ;;  %v1736_v61 = vmul.f32 0.125, %v1259_v55  ;;  %v331_v55 = vld [vmem:[%s1749_s13 + $0x40] sm:$0xff] }
 0x133   : > { %v562_v56 = vpop.f32.mrf.mxu0 }
 0x134   : > { %v1732_v58 = vmul.f32 0.125, %v562_v56 }
 0x135   : > { %v1262_v59 = vpop.f32.mrf.mxu0 }
 0x136   : > { %619 = vmax.xlane.f32.xlu1 %v1730_v57  ;;  %621 = vmax.xlane.f32.xlu0 %v1732_v58  ;;  %v1742_v63 = vmul.f32 0.125, %v1262_v59 }
 0x137   : > { %v572_v60 = vpop.f32.mrf.mxu0 }
 0x138   : > { %v1738_v62 = vmul.f32 0.125, %v572_v60 }
 0x13a   : > { %623 = vmax.xlane.f32.xlu1 %v1736_v61  ;;  %625 = vmax.xlane.f32.xlu0 %v1738_v62 }
 0x13e   : > { %627 = vmax.xlane.f32.xlu1 %v1742_v63 }
 0x1a7   : > { %v598_v6 = vpop.xlane.xlu0 %597 }
 0x1a8   : > { %v629_v7 = vsub.f32 %v1697_v34, %v598_v6 }
 0x1aa   : > { %v645_v8 = vmul.f32 1.442695, %v629_v7  ;;  %v326_v7 = vld [vmem:[%s1749_s13 + $0x18] sm:$0xff] }
 0x1ab   : > { %v600_v9 = vpop.xlane.xlu0 %599  ;;  %v602_v10 = vpop.xlane.xlu1 %601 }
 0x1ac   : > { %1376 = vpow2.f32 %v645_v8  ;;  %v630_v11 = vsub.f32 %v1700_v37, %v600_v9  ;;  %v631_v12 = vsub.f32 %v1702_v38, %v602_v10  ;;  %v325_v9 = vld [vmem:[%s1749_s13 + $0x10] sm:$0xff] }
 0x1ae   : > { %v647_v13 = vmul.f32 1.442695, %v630_v11  ;;  %v649_v14 = vmul.f32 1.442695, %v631_v12  ;;  %v324_v11 = vld [vmem:[%s1749_s13 + $0x8] sm:$0xff] }
 0x1af   : > { %v604_v15 = vpop.xlane.xlu1 %603  ;;  %v606_v16 = vpop.xlane.xlu0 %605 }
 0x1b0   : > { %1378 = vpow2.f32 %v647_v13  ;;  %v632_v17 = vsub.f32 %v1706_v41, %v604_v15  ;;  %v633_v18 = vsub.f32 %v1708_v42, %v606_v16  ;;  %v323_v13 = vld [vmem:[%s1749_s13] sm:$0xff] }
 0x1b1   : > { %1380 = vpow2.f32 %v649_v14 }
 0x1b2   : > { %v651_v19 = vmul.f32 1.442695, %v632_v17  ;;  %v653_v20 = vmul.f32 1.442695, %v633_v18 }
 0x1b3   : > { %v608_v21 = vpop.xlane.xlu1 %607  ;;  %v610_v22 = vpop.xlane.xlu0 %609 }
 0x1b4   : > { %1382 = vpow2.f32 %v651_v19  ;;  %v634_v23 = vsub.f32 %v1712_v45, %v608_v21  ;;  %v635_v24 = vsub.f32 %v1714_v46, %v610_v22 }
 0x1b5   : > { %1384 = vpow2.f32 %v653_v20 }
 0x1b6   : > { %v655_v25 = vmul.f32 1.442695, %v634_v23  ;;  %v657_v26 = vmul.f32 1.442695, %v635_v24 }
 0x1b7   : > { %v612_v27 = vpop.xlane.xlu1 %611  ;;  %v614_v28 = vpop.xlane.xlu0 %613 }
 0x1b8   : > { %1386 = vpow2.f32 %v655_v25  ;;  %v636_v29 = vsub.f32 %v1718_v49, %v612_v27  ;;  %v637_v30 = vsub.f32 %v1720_v50, %v614_v28 }
 0x1b9   : > { %v1766_v31 = vpop.eup %1376  ;;  %1388 = vpow2.f32 %v657_v26 }
 0x1ba   : > { %v659_v32 = vmul.f32 1.442695, %v636_v29  ;;  %v661_v33 = vmul.f32 1.442695, %v637_v30  ;;  %677 = vadd.xlane.f32.xlu0 %v1766_v31 }
 0x1bb   : > { %v616_v34 = vpop.xlane.xlu1 %615  ;;  %v618_v35 = vpop.xlane.xlu0 %617 }
 0x1bc   : > { %1390 = vpow2.f32 %v659_v32  ;;  %v638_v36 = vsub.f32 %v1724_v53, %v616_v34  ;;  %v639_v37 = vsub.f32 %v1726_v54, %v618_v35  ;;  %v332_v54 = vld [vmem:[%s1749_s13 + $0x48] sm:$0xff] }
 0x1bd   : > { %v1771_v38 = vpop.eup %1378  ;;  %1392 = vpow2.f32 %v661_v33  ;;  %1275 = vmatprep.subr.mxu1 %v332_v54 }
 0x1be   : > { %v1773_v39 = vpop.eup %1380  ;;  %v663_v40 = vmul.f32 1.442695, %v638_v36  ;;  %v665_v41 = vmul.f32 1.442695, %v639_v37  ;;  %679 = vadd.xlane.f32.xlu1 %v1771_v38  ;;  %1276 = vmatpush3.msra.mxu1 %v332_v54 }
 0x1bf   : > { %681 = vadd.xlane.f32.xlu0 %v1773_v39  ;;  %v620_v42 = vpop.xlane.xlu1 %619  ;;  %v622_v43 = vpop.xlane.xlu0 %621  ;;  %1277 = vmatprep.subr.mxu1 %v331_v55 }
 0x1c0   : > { %1394 = vpow2.f32 %v663_v40  ;;  %v640_v44 = vsub.f32 %v1730_v57, %v620_v42  ;;  %v641_v45 = vsub.f32 %v1732_v58, %v622_v43  ;;  %1278 = vmatpush3.msra.mxu1 %v331_v55 }
 0x1c1   : > { %v1779_v46 = vpop.eup %1382  ;;  %1396 = vpow2.f32 %v665_v41 }
 0x1c2   : > { %v1781_v47 = vpop.eup %1384  ;;  %v667_v48 = vmul.f32 1.442695, %v640_v44  ;;  %v669_v49 = vmul.f32 1.442695, %v641_v45  ;;  %683 = vadd.xlane.f32.xlu1 %v1779_v46 }
 0x1c3   : > { %685 = vadd.xlane.f32.xlu0 %v1781_v47  ;;  %v624_v50 = vpop.xlane.xlu1 %623  ;;  %v626_v51 = vpop.xlane.xlu0 %625 }
 0x1c4   : > { %1398 = vpow2.f32 %v667_v48  ;;  %v642_v52 = vsub.f32 %v1736_v61, %v624_v50  ;;  %v643_v53 = vsub.f32 %v1738_v62, %v626_v51  ;;  %v330_v62 = vld [vmem:[%s1749_s13 + $0x38] sm:$0xff] }
 0x1c5   : > { %v1789_v56 = vpop.eup %1386  ;;  %1400 = vpow2.f32 %v669_v49  ;;  %1279 = vmatprep.subr.mxu1 %v330_v62 }
 0x1c6   : > { %v1791_v57 = vpop.eup %1388  ;;  %v671_v58 = vmul.f32 1.442695, %v642_v52  ;;  %v673_v59 = vmul.f32 1.442695, %v643_v53  ;;  %687 = vadd.xlane.f32.xlu1 %v1789_v56  ;;  %1280 = vmatpush3.msra.mxu1 %v330_v62 }
 0x1c7   : > { %689 = vadd.xlane.f32.xlu0 %v1791_v57  ;;  %v628_v60 = vpop.xlane.xlu1 %627  ;;  %1281 = vmatprep.subr.mxu1 %v329_v1 }
 0x1c8   : > { %1402 = vpow2.f32 %v671_v58  ;;  %v644_v61 = vsub.f32 %v1742_v63, %v628_v60  ;;  %1282 = vmatpush3.msra.mxu1 %v329_v1  ;;  %v328_v63 = vld [vmem:[%s1749_s13 + $0x28] sm:$0xff] }
 0x1c9   : > { %v1797_v0 = vpop.eup %1390  ;;  %1404 = vpow2.f32 %v673_v59  ;;  %1283 = vmatprep.subr.mxu1 %v328_v63 }
 0x1ca   : > { %v1800_v2 = vpop.eup %1392  ;;  %v675_v3 = vmul.f32 1.442695, %v644_v61  ;;  %691 = vadd.xlane.f32.xlu1 %v1797_v0  ;;  %1284 = vmatpush3.msra.mxu1 %v328_v63 }
 0x1cb   : > { %693 = vadd.xlane.f32.xlu0 %v1800_v2  ;;  %1285 = vmatprep.subr.mxu1 %v327_v5 }
 0x1cc   : > { %1406 = vpow2.f32 %v675_v3  ;;  %1286 = vmatpush3.msra.mxu1 %v327_v5 }
 0x1cd   : > { %v1805_v4 = vpop.eup %1394  ;;  %1287 = vmatprep.subr.mxu1 %v326_v7 }
 0x1ce   : > { %v1808_v6 = vpop.eup %1396  ;;  %695 = vadd.xlane.f32.xlu1 %v1805_v4  ;;  %1288 = vmatpush3.msra.mxu1 %v326_v7 }
 0x1cf   : > { %697 = vadd.xlane.f32.xlu0 %v1808_v6  ;;  %1289 = vmatprep.subr.mxu1 %v325_v9 }
 0x1d0   : > { %1290 = vmatpush3.msra.mxu1 %v325_v9 }
 0x1d1   : > { %v1813_v8 = vpop.eup %1398  ;;  %1291 = vmatprep.subr.mxu1 %v324_v11 }
 0x1d2   : > { %v1816_v10 = vpop.eup %1400  ;;  %699 = vadd.xlane.f32.xlu1 %v1813_v8  ;;  %1292 = vmatpush3.msra.mxu1 %v324_v11 }
 0x1d3   : > { %701 = vadd.xlane.f32.xlu0 %v1816_v10  ;;  %1293 = vmatprep.subr.mxu1 %v323_v13 }
 0x1d4   : > { %1294 = vmatpush3.msra.mxu1 %v323_v13 }
 0x1d5   : > { %v1821_v12 = vpop.eup %1402 }
 0x1d6   : > { %v1824_v14 = vpop.eup %1404  ;;  %703 = vadd.xlane.f32.xlu1 %v1821_v12 }
 0x1d7   : > { %705 = vadd.xlane.f32.xlu0 %v1824_v14 }
 0x1d9   : > { %v1828_v15 = vpop.eup %1406 }
 0x1da   : > { %707 = vadd.xlane.f32.xlu1 %v1828_v15 }
 0x243   : > { %v678_v16 = vpop.xlane.xlu0 %677 }
 0x244   : > { %1408 = vrcp.f32 %v678_v16 }
 0x247   : > { %v680_v17 = vpop.xlane.xlu1 %679 }
 0x248   : > { %1410 = vrcp.f32 %v680_v17  ;;  %v682_v18 = vpop.xlane.xlu0 %681 }
 0x249   : > { %1412 = vrcp.f32 %v682_v18 }
 0x24b   : > { %v684_v19 = vpop.xlane.xlu1 %683 }
 0x24c   : > { %1414 = vrcp.f32 %v684_v19  ;;  %v686_v20 = vpop.xlane.xlu0 %685 }
 0x24d   : > { %1416 = vrcp.f32 %v686_v20 }
 0x24f   : > { %v688_v21 = vpop.xlane.xlu1 %687 }
 0x250   : > { %1418 = vrcp.f32 %v688_v21  ;;  %v690_v22 = vpop.xlane.xlu0 %689 }
 0x251   : > { %v1409_v23 = vpop.eup %1408  ;;  %1420 = vrcp.f32 %v690_v22 }
 0x252   : > { %v725_v24 = vmul.f32 %v1409_v23, %v1766_v31 }
 0x253   : > { %v692_v25 = vpop.xlane.xlu1 %691 }
 0x254   : > { %1422 = vrcp.f32 %v692_v25  ;;  %v694_v26 = vpop.xlane.xlu0 %693  ;;  %1295 = vmatprep.mubr.f32.mxu1 %v725_v24  ;;  %902 = vst [vmem:[%s1835_s22] sm:$0xff] %v725_v24 }
 0x255   : > { %v1411_v27 = vpop.eup %1410  ;;  %1424 = vrcp.f32 %v694_v26 }
 0x256   : > { %v1413_v28 = vpop.eup %1412  ;;  %v726_v29 = vmul.f32 %v1411_v27, %v1771_v38 }
 0x257   : > { %v696_v30 = vpop.xlane.xlu1 %695  ;;  %v727_v32 = vmul.f32 %v1413_v28, %v1773_v39 }
 0x258   : > { %1426 = vrcp.f32 %v696_v30  ;;  %v698_v31 = vpop.xlane.xlu0 %697  ;;  %1296 = vmatmul.mubr.f32.vlgmr.msra.gmra.mxu1 %v726_v29  ;;  %903 = vst [vmem:[%s1835_s22 + $0x8] sm:$0xff] %v726_v29 }
 0x259   : > { %v1415_v33 = vpop.eup %1414  ;;  %1428 = vrcp.f32 %v698_v31  ;;  %1298 = vmatprep.mubr.f32.mxu1 %v727_v32  ;;  %904 = vst [vmem:[%s1835_s22 + $0x10] sm:$0xff] %v727_v32 }
 0x25a   : > { %v1417_v34 = vpop.eup %1416  ;;  %v728_v35 = vmul.f32 %v1415_v33, %v1779_v46 }
 0x25b   : > { %v700_v36 = vpop.xlane.xlu1 %699  ;;  %v729_v37 = vmul.f32 %v1417_v34, %v1781_v47 }
 0x25c   : > { %1430 = vrcp.f32 %v700_v36  ;;  %v702_v38 = vpop.xlane.xlu0 %701  ;;  %1299 = vmatmul.mubr.f32.gmra.mxu1 %v728_v35  ;;  %905 = vst [vmem:[%s1835_s22 + $0x18] sm:$0xff] %v728_v35 }
 0x25d   : > { %v1419_v39 = vpop.eup %1418  ;;  %1432 = vrcp.f32 %v702_v38  ;;  %1301 = vmatprep.mubr.f32.mxu1 %v729_v37  ;;  %906 = vst [vmem:[%s1835_s22 + $0x20] sm:$0xff] %v729_v37 }
 0x25e   : > { %v1421_v40 = vpop.eup %1420  ;;  %v730_v41 = vmul.f32 %v1419_v39, %v1789_v56 }
 0x25f   : > { %v704_v42 = vpop.xlane.xlu1 %703  ;;  %v731_v43 = vmul.f32 %v1421_v40, %v1791_v57 }
 0x260   : > { %1434 = vrcp.f32 %v704_v42  ;;  %v706_v44 = vpop.xlane.xlu0 %705  ;;  %1302 = vmatmul.mubr.f32.gmra.mxu1 %v730_v41  ;;  %907 = vst [vmem:[%s1835_s22 + $0x28] sm:$0xff] %v730_v41 }
 0x261   : > { %v1423_v45 = vpop.eup %1422  ;;  %1436 = vrcp.f32 %v706_v44  ;;  %1304 = vmatprep.mubr.f32.mxu1 %v731_v43  ;;  %908 = vst [vmem:[%s1835_s22 + $0x30] sm:$0xff] %v731_v43 }
 0x262   : > { %v1425_v46 = vpop.eup %1424  ;;  %v732_v47 = vmul.f32 %v1423_v45, %v1797_v0 }
 0x263   : > { %v708_v48 = vpop.xlane.xlu1 %707  ;;  %v733_v49 = vmul.f32 %v1425_v46, %v1800_v2 }
 0x264   : > { %1438 = vrcp.f32 %v708_v48  ;;  %1305 = vmatmul.mubr.f32.gmra.mxu1 %v732_v47  ;;  %909 = vst [vmem:[%s1835_s22 + $0x38] sm:$0xff] %v732_v47 }
 0x265   : > { %v1427_v50 = vpop.eup %1426  ;;  %1307 = vmatprep.mubr.f32.mxu1 %v733_v49  ;;  %910 = vst [vmem:[%s1835_s22 + $0x40] sm:$0xff] %v733_v49 }
 0x266   : > { %v1429_v51 = vpop.eup %1428  ;;  %v734_v52 = vmul.f32 %v1427_v50, %v1805_v4 }
 0x267   : > { %v735_v53 = vmul.f32 %v1429_v51, %v1808_v6 }
 0x268   : > { %1308 = vmatmul.mubr.f32.gmra.mxu1 %v734_v52  ;;  %911 = vst [vmem:[%s1835_s22 + $0x48] sm:$0xff] %v734_v52 }
 0x269   : > { %v1431_v54 = vpop.eup %1430  ;;  %1310 = vmatprep.mubr.f32.mxu1 %v735_v53  ;;  %912 = vst [vmem:[%s1835_s22 + $0x50] sm:$0xff] %v735_v53 }
 0x26a   : > { %v1433_v55 = vpop.eup %1432  ;;  %v736_v56 = vmul.f32 %v1431_v54, %v1813_v8 }
 0x26b   : > { %v737_v57 = vmul.f32 %v1433_v55, %v1816_v10 }
 0x26c   : > { %1311 = vmatmul.mubr.f32.gmra.mxu1 %v736_v56  ;;  %913 = vst [vmem:[%s1835_s22 + $0x58] sm:$0xff] %v736_v56 }
 0x26d   : > { %v1435_v58 = vpop.eup %1434  ;;  %1313 = vmatprep.mubr.f32.mxu1 %v737_v57  ;;  %914 = vst [vmem:[%s1835_s22 + $0x60] sm:$0xff] %v737_v57 }
 0x26e   : > { %v1437_v59 = vpop.eup %1436  ;;  %v738_v60 = vmul.f32 %v1435_v58, %v1821_v12 }
 0x26f   : > { %v739_v61 = vmul.f32 %v1437_v59, %v1824_v14 }
 0x270   : > { %1314 = vmatmul.mubr.f32.gmra.mxu1 %v738_v60  ;;  %915 = vst [vmem:[%s1835_s22 + $0x68] sm:$0xff] %v738_v60 }
 0x271   : > { %v1439_v62 = vpop.eup %1438  ;;  %1316 = vmatprep.mubr.f32.mxu1 %v739_v61  ;;  %916 = vst [vmem:[%s1835_s22 + $0x70] sm:$0xff] %v739_v61 }
 0x272   : > { %v740_v0 = vmul.f32 %v1439_v62, %v1828_v15 }
 0x274   : > { %1317 = vmatmul.mubr.f32.gmra.mxu1 %v740_v0  ;;  %917 = vst [vmem:[%s1835_s22 + $0x78] sm:$0xff] %v740_v0 }
 0x275   : > { %1453 = shalt.err (!%p1450_p5)
}
 0x276   : > { %s1454_s11 = scalar_lea.hbm %s1873_s6, 2048  ;;  %s1458_s14 = scalar_lea.hbm %s1966_s4, 16384 }
 0x277   : > { %p1455_p6 = scmp.ne.s32.totalorder %s1873_s6, %s1454_s11  ;;  %p1459_p10 = scmp.lt.s32.totalorder %s1873_s6, %s1966_s4 }
 0x278   : > { %p1460_p11 = scmp.lt.s32.totalorder %s1458_s14, %s1454_s11 }
 0x279   : > { %p1456_p7 = pnand %p1455_p6, %p1586_p4 }
 0x27a   : > { %p1461_p12 = por %p1460_p11, %p1459_p10 }
 0x27b   : > { %p1457_p9 = pneg %p1456_p7 }
 0x27d   : > { %p1462_p13 = pnand %p1461_p12, %p1457_p9 }
 0x27f   : > { %1465 = shalt.err (!%p1462_p13)
}
 0x280   : > { %s1519_s24 = smov 128   ;;  %s1520_s29 = smov 8  }
 0x281   : > { %1319 = dma.vmem_to_hbm [thread:$0]  (%p1586_p4), %s1875_s26, 2048, %s1873_s6, %s1879_s7, %s1519_s24, %s1519_s24, %s1520_s29  }
 0x282   : > { %s1906_s18 = scalar_lea.vmem %s1965_s3, %s1603_s30 }
 0x318   : > { %v1297_v1 = vpop.f32.mrf.mxu1 }
 0x319   : > { %887 = vst.msk [vmem:[%s1906_s18 + $0x8] sm:$0xff] %vm339_vm0, %v1297_v1 }
 0x31a   : > { %v807_v2 = vpop.f32.mrf.mxu1 }
 0x31b   : > { %886 = vst.msk [vmem:[%s1906_s18] sm:$0xff] %vm339_vm0, %v807_v2 }
 0x31c   : > { %v1300_v3 = vpop.f32.mrf.mxu1 }
 0x31d   : > { %889 = vst.msk [vmem:[%s1906_s18 + $0x18] sm:$0xff] %vm339_vm0, %v1300_v3 }
 0x31e   : > { %v817_v63 = vpop.f32.mrf.mxu1 }
 0x31f   : > { %888 = vst.msk [vmem:[%s1906_s18 + $0x10] sm:$0xff] %vm339_vm0, %v817_v63 }
 0x320   : > { %v1303_v4 = vpop.f32.mrf.mxu1 }
 0x321   : > { %891 = vst.msk [vmem:[%s1906_s18 + $0x28] sm:$0xff] %vm339_vm0, %v1303_v4 }
 0x322   : > { %v827_v5 = vpop.f32.mrf.mxu1 }
 0x323   : > { %890 = vst.msk [vmem:[%s1906_s18 + $0x20] sm:$0xff] %vm339_vm0, %v827_v5 }
 0x324   : > { %v1306_v6 = vpop.f32.mrf.mxu1 }
 0x325   : > { %893 = vst.msk [vmem:[%s1906_s18 + $0x38] sm:$0xff] %vm339_vm0, %v1306_v6 }
 0x326   : > { %v837_v7 = vpop.f32.mrf.mxu1 }
 0x327   : > { %892 = vst.msk [vmem:[%s1906_s18 + $0x30] sm:$0xff] %vm339_vm0, %v837_v7 }
 0x328   : > { %v1309_v8 = vpop.f32.mrf.mxu1 }
 0x329   : > { %895 = vst.msk [vmem:[%s1906_s18 + $0x48] sm:$0xff] %vm339_vm0, %v1309_v8 }
 0x32a   : > { %v847_v9 = vpop.f32.mrf.mxu1 }
 0x32b   : > { %894 = vst.msk [vmem:[%s1906_s18 + $0x40] sm:$0xff] %vm339_vm0, %v847_v9 }
 0x32c   : > { %v1312_v10 = vpop.f32.mrf.mxu1 }
 0x32d   : > { %897 = vst.msk [vmem:[%s1906_s18 + $0x58] sm:$0xff] %vm339_vm0, %v1312_v10 }
 0x32e   : > { %v857_v11 = vpop.f32.mrf.mxu1 }
 0x32f   : > { %896 = vst.msk [vmem:[%s1906_s18 + $0x50] sm:$0xff] %vm339_vm0, %v857_v11 }
 0x330   : > { %v1315_v12 = vpop.f32.mrf.mxu1 }
 0x331   : > { %899 = vst.msk [vmem:[%s1906_s18 + $0x68] sm:$0xff] %vm339_vm0, %v1315_v12 }
 0x332   : > { %v867_v13 = vpop.f32.mrf.mxu1 }
 0x333   : > { %898 = vst.msk [vmem:[%s1906_s18 + $0x60] sm:$0xff] %vm339_vm0, %v867_v13 }
 0x334   : > { %v1318_v14 = vpop.f32.mrf.mxu1 }
 0x335   : > { %901 = vst.msk [vmem:[%s1906_s18 + $0x78] sm:$0xff] %vm339_vm0, %v1318_v14 }
 0x336   : > { %v877_v15 = vpop.f32.mrf.mxu1 }
 0x337   : > { %900 = vst.msk [vmem:[%s1906_s18 + $0x70] sm:$0xff] %vm339_vm0, %v877_v15 }
 0x338 PF: > { %p1325_p4 = scmp.ge.s32.totalorder %s1516_s20, 2  ;;  %s974_s25 = sand.u32 1, %s1496_s15  }
 0x339   : > { %s975_s30 = scalar_lea.sflag [#allocation3], %s974_s25 }
 0x33a   : > { %p1322_p0 = pnand %p1325_p4, %p1593_p8 }
 0x33c   : > { %p1323_p1 = pneg %p1322_p0 }
 0x33e   : > { %1491 = dma.done.wait (%p1323_p1), %s975_s30, 2048  }
 0x33f   : > { %1493 = vsyncadd (%p1323_p1), %s975_s30, 4294965248  ;;  %s18_s20 = sadd.s32 1, %s1516_s20   ;;  %s1969_s15 = smov %s1500_s16 }
 0x340   : > { %p15_p2 = scmp.ge.s32.totalorder %s18_s20, 10   ;;  %s1970_s16 = smov %s1504_s17 }
 0x341   : > { %s1971_s17 = smov %s1599_s28  ;;  %s1972_s18 = smov %s1512_s19 }
 0x342   : > { %s1973_s19 = smov %s1975_s23  ;;  %17 = sbr.rel (!%p15_p2) target bundleno = 4 (0x4), region = 85 }
 0x347   :  { %980 = vsyncpa [#allocation3], 1 }
 0x348   :  { %982 = vsyncpa [#allocation3 + $0x1], 1 }

</bundles_post_ra>
